<compile_context>
chip_gen: v7x
topology: tpu7x:2x2x1
jax: 0.10.0
libtpu: 0.0.40
codegen_flags: <defaults>
</compile_context>

<pallas_src>
from functools import partial
import math

import numpy as np
import jax
import jax.numpy as jnp
from jax.experimental import pallas as pl
from jax.experimental.pallas import tpu as pltpu


def _vmem_limit_bytes():
    """Generation-aware scoped-VMEM limit: ~75% of physical VMEM."""
    cap = 64 * 1024 * 1024                      # conservative fallback (= v7x physical)
    try:
        info = pltpu.get_tpu_info()
        cap = int(getattr(info, "vmem_capacity_bytes", cap))
    except Exception:
        pass
    return (cap * 3) // 4


# ----------------------------------------------------------------------------
# Bilinear interpolation matrices (PyTorch interpolate, align_corners=False)
# ----------------------------------------------------------------------------
def bilinear_matrix(n_out: int, n_in: int) -> np.ndarray:
    """M such that y = M @ x bilinearly resizes a length-n_in signal to n_out."""
    scale = n_in / n_out
    i = np.arange(n_out, dtype=np.float64)
    s = (i + 0.5) * scale - 0.5
    s = np.clip(s, 0.0, None)                   # PyTorch clamps negative coords
    i0 = np.clip(np.floor(s).astype(np.int64), 0, n_in - 1)
    i1 = np.minimum(i0 + 1, n_in - 1)
    frac = s - i0
    m = np.zeros((n_out, n_in), dtype=np.float32)
    m[np.arange(n_out), i0] += (1.0 - frac).astype(np.float32)
    m[np.arange(n_out), i1] += frac.astype(np.float32)
    return m


# ----------------------------------------------------------------------------
# Kernel 1: separable bilinear blur (down then up), one (H, W) channel / step.
# The Uw^T matrix carries the patchify column permutation (dw-major, wp-minor)
# so the encoder can consume the output without an XLA transpose.
#   x block : (1, 1, H, W)  f32     (bf16 would halve input DMA if the producer
#                                    emits bf16; do NOT add a standalone cast)
#   dh      : (H/f, H)      bf16
#   uh      : (H, H/f)      bf16
#   dwt     : (W, W/f)      bf16
#   uwtp    : (W/f, W)      bf16    (columns permuted for patchify)
#   o block : (1, 1, H, W)  bf16
# ----------------------------------------------------------------------------
def blur_kernel(x_ref, dh_ref, uh_ref, dwt_ref, uwtp_ref, o_ref):
    x2d = x_ref[0, 0].astype(jnp.bfloat16)                                   # (H, W)
    # Downsample both dims first (small intermediates), then upsample.
    t = jnp.dot(dh_ref[...], x2d, preferred_element_type=jnp.float32)        # (H/f, W)
    t = jnp.dot(t.astype(jnp.bfloat16), dwt_ref[...],
                preferred_element_type=jnp.float32)                          # (H/f, W/f)
    t = jnp.dot(uh_ref[...], t.astype(jnp.bfloat16),
                preferred_element_type=jnp.float32)                          # (H, W/f)
    t = jnp.dot(t.astype(jnp.bfloat16), uwtp_ref[...],
                preferred_element_type=jnp.float32)                          # (H, W) perm cols
    o_ref[0, 0] = t.astype(o_ref.dtype)


def bilinear_blur_permuted(x, dh, uh, dwt, uwtp):
    B, C, H, W = x.shape
    Hf = dh.shape[0]
    Wf = dwt.shape[1]
    return pl.pallas_call(
        blur_kernel,
        out_shape=jax.ShapeDtypeStruct((B, C, H, W), jnp.bfloat16),
        grid=(B, C),
        in_specs=[
            pl.BlockSpec((1, 1, H, W), lambda b, c: (b, c, 0, 0)),
            pl.BlockSpec((Hf, H), lambda b, c: (0, 0)),
            pl.BlockSpec((H, Hf), lambda b, c: (0, 0)),
            pl.BlockSpec((W, Wf), lambda b, c: (0, 0)),
            pl.BlockSpec((Wf, W), lambda b, c: (0, 0)),
        ],
        out_specs=pl.BlockSpec((1, 1, H, W), lambda b, c: (b, c, 0, 0)),
        compiler_params=pltpu.CompilerParams(
            dimension_semantics=("parallel", "parallel"),
            vmem_limit_bytes=_vmem_limit_bytes()),
    )(x, dh, uh, dwt, uwtp)


# ----------------------------------------------------------------------------
# Kernel 2: surrogate VAE encoder with the patchify fused in.
# Input columns are already permuted dw-major (done by the blur), so the
# "conv" over a patch row is p x C accumulate matmuls on contiguous Wp-wide
# lane slices — no data rearrangement between the two pallas_calls.
#   x block : (1, C, ROWS, W)  bf16   (ROWS = HPB * p, multiple of 16)
#   w       : (C, p, zc, p)    bf16   mean half only, scale_factor folded in
#   bias    : (zc, 1)          f32    scale_factor folded in
#   o block : (1, HPB, zc, Wp) f32
# ----------------------------------------------------------------------------
def encode_kernel(x_ref, w_ref, b_ref, o_ref, *, C, p, Wp, HPB):
    zc = w_ref.shape[2]
    bias = b_ref[...]                                            # (zc, 1) f32
    for hp in range(HPB):
        acc = jnp.zeros((zc, Wp), jnp.float32)
        for c in range(C):
            for dw in range(p):
                sl = x_ref[0, c, hp * p:(hp + 1) * p, dw * Wp:(dw + 1) * Wp]  # (p, Wp)
                acc = acc + jnp.dot(w_ref[c, dw], sl,
                                    preferred_element_type=jnp.float32)
        o_ref[0, hp] = (acc + bias).astype(o_ref.dtype)


def _encoder_rows(H, p):
    # Rows per encoder block: a multiple of the patch size and of the bf16
    # sublane tile (16) that divides H; fall back to the whole image.
    rows = (p * 16) // math.gcd(p, 16)
    if H % rows != 0:
        rows = H
    return rows


def encode_fused(xb, w_enc, bias_enc, *, patch, zc):
    B, C, H, W = xb.shape
    p = patch
    Hp, Wp = H // p, W // p
    rows = _encoder_rows(H, p)
    hpb = rows // p
    n_hg = H // rows
    return pl.pallas_call(
        partial(encode_kernel, C=C, p=p, Wp=Wp, HPB=hpb),
        out_shape=jax.ShapeDtypeStruct((B, Hp, zc, Wp), jnp.float32),
        grid=(B, n_hg),
        in_specs=[
            pl.BlockSpec((1, C, rows, W), lambda b, hg: (b, 0, hg, 0)),
            pl.BlockSpec((C, p, zc, p), lambda b, hg: (0, 0, 0, 0)),
            pl.BlockSpec((zc, 1), lambda b, hg: (0, 0)),
        ],
        out_specs=pl.BlockSpec((1, hpb, zc, Wp), lambda b, hg: (b, hg, 0, 0)),
        compiler_params=pltpu.CompilerParams(
            dimension_semantics=("parallel", "parallel"),
            vmem_limit_bytes=_vmem_limit_bytes()),
    )(xb, w_enc, bias_enc)


# ----------------------------------------------------------------------------
# Host-side parameter preparation
# ----------------------------------------------------------------------------
def build_params(w_conv, b_conv, *, H, W, patch, zc, down_blur_factor, scale_factor):
    p = patch
    Wp = W // p

    # Encoder weight: Gaussian-mean half only, scale_factor folded in,
    # layout (C, dw, zc, dh) so the kernel indexes w[c, dw] -> (zc, dh).
    w_mean = np.asarray(w_conv)[:zc].astype(np.float32) * scale_factor   # (zc, C, p, p)
    w_enc = np.ascontiguousarray(np.transpose(w_mean, (1, 3, 0, 2)))     # (C, p, zc, p)
    bias_enc = (np.asarray(b_conv)[:zc].astype(np.float32) * scale_factor).reshape(zc, 1)

    params = {
        "patch": p,
        "zc": zc,
        "w_enc": jnp.asarray(w_enc, dtype=jnp.bfloat16),
        "bias_enc": jnp.asarray(bias_enc, dtype=jnp.float32),
    }

    # Column permutation (wp, dw) -> column index dw*Wp + wp, composed into Uw^T.
    perm = np.arange(W).reshape(Wp, p).T.reshape(-1)

    ref_mats = None
    if down_blur_factor > 1:
        f = down_blur_factor
        Dh = bilinear_matrix(H // f, H)
        Uh = bilinear_matrix(H, H // f)
        Dw = bilinear_matrix(W // f, W)
        Uw = bilinear_matrix(W, W // f)
        params["Dh"] = jnp.asarray(Dh, dtype=jnp.bfloat16)                 # (H/f, H)
        params["Uh"] = jnp.asarray(Uh, dtype=jnp.bfloat16)                 # (H, H/f)
        params["DwT"] = jnp.asarray(Dw.T, dtype=jnp.bfloat16)              # (W, W/f)
        params["UwT_perm"] = jnp.asarray(Uw.T[:, perm], dtype=jnp.bfloat16)  # (W/f, W)
        ref_mats = (jnp.asarray(Uh @ Dh), jnp.asarray(Uw @ Dw))            # f32 composed
    return params, ref_mats


# ----------------------------------------------------------------------------
# VAEEmbedder forward
# ----------------------------------------------------------------------------
def vae_embedder_forward(x, params, *, down_blur_factor):
    B, C, H, W = x.shape
    p = params["patch"]
    zc = params["zc"]
    Wp = W // p

    if down_blur_factor > 1:
        xb = bilinear_blur_permuted(x, params["Dh"], params["Uh"],
                                    params["DwT"], params["UwT_perm"])
    else:
        # TODO(synk): fold this column permutation into the encoder via strided
        # pl.ds loads so the down_blur_factor == 1 path also avoids an XLA pass.
        xb = jnp.transpose(x.reshape(B, C, H, Wp, p),
                           (0, 1, 2, 4, 3)).reshape(B, C, H, W).astype(jnp.bfloat16)

    z_hzw = encode_fused(xb, params["w_enc"], params["bias_enc"],
                         patch=p, zc=zc)                        # (B, Hp, zc, Wp)
    # NCHW transpose of the latent only (~12x smaller than the input image);
    # the big post-blur activation never takes an extra HBM round trip.
    return jnp.transpose(z_hzw, (0, 2, 1, 3))                   # (B, zc, Hp, Wp)


# ----------------------------------------------------------------------------
# Pure-JAX f32 reference for verification
# ----------------------------------------------------------------------------
def vae_embedder_ref(x, w_conv, b_conv, Bh32, Bw32, *, down_blur_factor,
                     scale_factor, patch, zc):
    B, C, H, W = x.shape
    if down_blur_factor > 1:
        x = jnp.einsum("uh,bchw,vw->bcuv", Bh32, x, Bw32)
    Hp, Wp = H // patch, W // patch
    xp = x.reshape(B, C, Hp, patch, Wp, patch)
    xp = jnp.transpose(xp, (0, 2, 4, 1, 3, 5)).reshape(B, Hp * Wp, C * patch * patch)
    w_flat = w_conv.reshape(2 * zc, C * patch * patch)
    y = xp @ w_flat.T + b_conv                        # (B, Np, 2*zc)
    z = scale_factor * y[..., :zc]                    # Gaussian mode + scale
    return jnp.transpose(z.reshape(B, Hp, Wp, zc), (0, 3, 1, 2))


if __name__ == "__main__":
    # small deterministic config
    B, C, H, W = 2, 3, 32, 32
    down_blur_factor = 2
    patch = 4                      # surrogate VAE spatial downsampling factor
    zc = 4                         # latent channels
    scale_factor = 0.18215

    key = jax.random.PRNGKey(0)
    kx, kw, kb = jax.random.split(key, 3)
    x = jax.random.normal(kx, (B, C, H, W), dtype=jnp.float32)

    # deterministic surrogate encoder parameters (conv weight (2*zc, C, p, p))
    oc2 = 2 * zc
    w_conv = jax.random.normal(kw, (oc2, C, patch, patch), dtype=jnp.float32) * 0.05
    b_conv = jax.random.normal(kb, (oc2,), dtype=jnp.float32) * 0.01

    params, ref_mats = build_params(w_conv, b_conv, H=H, W=W, patch=patch, zc=zc,
                                    down_blur_factor=down_blur_factor,
                                    scale_factor=scale_factor)

    z = vae_embedder_forward(x, params, down_blur_factor=down_blur_factor)
    z = jax.block_until_ready(z)

    Bh32, Bw32 = ref_mats
    z_ref = vae_embedder_ref(x, w_conv, b_conv, Bh32, Bw32,
                             down_blur_factor=down_blur_factor,
                             scale_factor=scale_factor, patch=patch, zc=zc)

    # bf16 MXU operands (4 blur stages + bf16 activation/weights) vs f32 ref
    np.testing.assert_allclose(np.asarray(z), np.asarray(z_ref),
                               rtol=2e-2, atol=2e-2)
    assert z.shape == (B, zc, H // patch, W // patch)

    print("KERNEL_OK")
</pallas_src>

<mosaic_0001>
module attributes {stable_mosaic.version = 11 : i64} {
  func.func @blur_kernel(%arg0: i32, %arg1: i32, %arg2: memref<1x1x32x32xf32, #tpu.memory_space<vmem>>, %arg3: memref<16x32xbf16, #tpu.memory_space<vmem>>, %arg4: memref<32x16xbf16, #tpu.memory_space<vmem>>, %arg5: memref<32x16xbf16, #tpu.memory_space<vmem>>, %arg6: memref<16x32xbf16, #tpu.memory_space<vmem>>, %arg7: memref<1x1x32x32xbf16, #tpu.memory_space<vmem>>) attributes {dimension_semantics = [#tpu.dimension_semantics<parallel>, #tpu.dimension_semantics<parallel>], iteration_bounds = array<i64: 2, 3>, scalar_prefetch = 0 : i64, scratch_operands = 0 : i64, tpu.core_type = #tpu.core_type<tc>, window_params = [{transform_indices = @transform_0, window_bounds = array<i64: 1, 1, 32, 32>}, {pipeline_mode = #tpu.pipeline_mode<synchronous>, transform_indices = @transform_1, window_bounds = array<i64: 16, 32>}, {pipeline_mode = #tpu.pipeline_mode<synchronous>, transform_indices = @transform_2, window_bounds = array<i64: 32, 16>}, {pipeline_mode = #tpu.pipeline_mode<synchronous>, transform_indices = @transform_3, window_bounds = array<i64: 32, 16>}, {pipeline_mode = #tpu.pipeline_mode<synchronous>, transform_indices = @transform_4, window_bounds = array<i64: 16, 32>}, {transform_indices = @transform_5, window_bounds = array<i64: 1, 1, 32, 32>}]} {
    %c0 = arith.constant 0 : index
    %c0_0 = arith.constant 0 : index
    %c0_1 = arith.constant 0 : index
    %c0_2 = arith.constant 0 : index
    %0 = vector.load %arg2[%c0, %c0_0, %c0_1, %c0_2] : memref<1x1x32x32xf32, #tpu.memory_space<vmem>>, vector<1x1x32x32xf32>
    %1 = vector.shape_cast %0 : vector<1x1x32x32xf32> to vector<32x32xf32>
    %2 = arith.truncf %1 : vector<32x32xf32> to vector<32x32xbf16>
    %c0_3 = arith.constant 0 : index
    %c0_4 = arith.constant 0 : index
    %3 = vector.load %arg3[%c0_3, %c0_4] : memref<16x32xbf16, #tpu.memory_space<vmem>>, vector<16x32xbf16>
    %cst = arith.constant dense<0.000000e+00> : vector<16x32xf32>
    %4 = tpu.matmul %3, %2, %cst {dimension_numbers = #tpu.dot_dimension_numbers<[1], [0], [0], [1], [0, 0, 1, 1], [], []>} : vector<16x32xbf16>, vector<32x32xbf16>, vector<16x32xf32> -> vector<16x32xf32>
    %5 = arith.truncf %4 : vector<16x32xf32> to vector<16x32xbf16>
    %c0_5 = arith.constant 0 : index
    %c0_6 = arith.constant 0 : index
    %6 = vector.load %arg5[%c0_5, %c0_6] : memref<32x16xbf16, #tpu.memory_space<vmem>>, vector<32x16xbf16>
    %cst_7 = arith.constant dense<0.000000e+00> : vector<16x16xf32>
    %7 = tpu.matmul %5, %6, %cst_7 {dimension_numbers = #tpu.dot_dimension_numbers<[1], [0], [0], [1], [0, 0, 1, 1], [], []>} : vector<16x32xbf16>, vector<32x16xbf16>, vector<16x16xf32> -> vector<16x16xf32>
    %c0_8 = arith.constant 0 : index
    %c0_9 = arith.constant 0 : index
    %8 = vector.load %arg4[%c0_8, %c0_9] : memref<32x16xbf16, #tpu.memory_space<vmem>>, vector<32x16xbf16>
    %9 = arith.truncf %7 : vector<16x16xf32> to vector<16x16xbf16>
    %cst_10 = arith.constant dense<0.000000e+00> : vector<32x16xf32>
    %10 = tpu.matmul %8, %9, %cst_10 {dimension_numbers = #tpu.dot_dimension_numbers<[1], [0], [0], [1], [0, 0, 1, 1], [], []>} : vector<32x16xbf16>, vector<16x16xbf16>, vector<32x16xf32> -> vector<32x16xf32>
    %11 = arith.truncf %10 : vector<32x16xf32> to vector<32x16xbf16>
    %c0_11 = arith.constant 0 : index
    %c0_12 = arith.constant 0 : index
    %12 = vector.load %arg6[%c0_11, %c0_12] : memref<16x32xbf16, #tpu.memory_space<vmem>>, vector<16x32xbf16>
    %cst_13 = arith.constant dense<0.000000e+00> : vector<32x32xf32>
    %13 = tpu.matmul %11, %12, %cst_13 {dimension_numbers = #tpu.dot_dimension_numbers<[1], [0], [0], [1], [0, 0, 1, 1], [], []>} : vector<32x16xbf16>, vector<16x32xbf16>, vector<32x32xf32> -> vector<32x32xf32>
    %14 = arith.truncf %13 : vector<32x32xf32> to vector<32x32xbf16>
    %c0_14 = arith.constant 0 : index
    %c0_15 = arith.constant 0 : index
    %c0_16 = arith.constant 0 : index
    %c0_17 = arith.constant 0 : index
    %15 = vector.load %arg7[%c0_14, %c0_15, %c0_16, %c0_17] : memref<1x1x32x32xbf16, #tpu.memory_space<vmem>>, vector<1x1x32x32xbf16>
    %16 = vector.shape_cast %15 : vector<1x1x32x32xbf16> to vector<32x32xbf16>
    %17 = vector.shape_cast %14 : vector<32x32xbf16> to vector<1x1x32x32xbf16>
    tpu.vector_store %arg7[%c0_14, %c0_15, %c0_16, %c0_17], %17 {strides = array<i32>} : memref<1x1x32x32xbf16, #tpu.memory_space<vmem>>, vector<1x1x32x32xbf16>,
    return
  }
  func.func @transform_0(%arg0: i32, %arg1: i32) -> (i32, i32, i32, i32) {
    %c0_i32 = arith.constant 0 : i32
    %c0_i32_0 = arith.constant 0 : i32
    %c0_i32_1 = arith.constant 0 : i32
    return %arg0, %arg1, %c0_i32, %c0_i32_0 : i32, i32, i32, i32
  }
  func.func @transform_1(%arg0: i32, %arg1: i32) -> (i32, i32) {
    %c0_i32 = arith.constant 0 : i32
    %c0_i32_0 = arith.constant 0 : i32
    %c0_i32_1 = arith.constant 0 : i32
    return %c0_i32, %c0_i32_0 : i32, i32
  }
  func.func @transform_2(%arg0: i32, %arg1: i32) -> (i32, i32) {
    %c0_i32 = arith.constant 0 : i32
    %c0_i32_0 = arith.constant 0 : i32
    %c0_i32_1 = arith.constant 0 : i32
    return %c0_i32, %c0_i32_0 : i32, i32
  }
  func.func @transform_3(%arg0: i32, %arg1: i32) -> (i32, i32) {
    %c0_i32 = arith.constant 0 : i32
    %c0_i32_0 = arith.constant 0 : i32
    %c0_i32_1 = arith.constant 0 : i32
    return %c0_i32, %c0_i32_0 : i32, i32
  }
  func.func @transform_4(%arg0: i32, %arg1: i32) -> (i32, i32) {
    %c0_i32 = arith.constant 0 : i32
    %c0_i32_0 = arith.constant 0 : i32
    %c0_i32_1 = arith.constant 0 : i32
    return %c0_i32, %c0_i32_0 : i32, i32
  }
  func.func @transform_5(%arg0: i32, %arg1: i32) -> (i32, i32, i32, i32) {
    %c0_i32 = arith.constant 0 : i32
    %c0_i32_0 = arith.constant 0 : i32
    %c0_i32_1 = arith.constant 0 : i32
    return %arg0, %arg1, %c0_i32, %c0_i32_0 : i32, i32, i32, i32
  }
}

</mosaic_0001>

<bundles_post_ra>
// kernel: tpu_custom_call.1
= control target key start
LH: loop header
LB: loop body
LE: loop exit
PB: predicated region body
PF: predicated region fallthrough
CT: control target
= control target key end

     0   :  { %10 = vsyncpa [#allocation3], 0  ;;  %s1197_s0 = inlined_call_operand.hbm [shape: f32[2,3,32,32], index: 0, kind: input, shape index: {}]   ;;  %s1198_s1 = inlined_call_operand.vmem [shape: bf16[16,32], index: 1, kind: input, shape index: {}]   ;;  %s1199_s2 = inlined_call_operand.vmem [shape: bf16[32,16], index: 2, kind: input, shape index: {}]   ;;  %s1200_s3 = inlined_call_operand.vmem [shape: bf16[32,16], index: 3, kind: input, shape index: {}]   ;;  %s1201_s4 = inlined_call_operand.vmem [shape: bf16[16,32], index: 4, kind: input, shape index: {}]   ;;  %s1202_s5 = inlined_call_operand.hbm [shape: bf16[2,3,32,32], index: 5, kind: output, shape index: {}]  }
   0x1   :  { %12 = vsyncpa [#allocation3 + $0x1], 0 }
   0x2   :  { %13 = vsyncpa [#allocation4], 0 }
   0x3   :  { %15 = vsyncpa [#allocation4 + $0x1], 0  ;;  %s979_s18 = smov 0   ;;  %s981_s19 = smov 0  }
   0x4   :  { %s983_s20 = smov 0   ;;  %s985_s21 = smov 0  }
   0x5   :  { %s987_s22 = smov 0   ;;  %s989_s23 = smov 0  }
   0x6   :  { %s991_s24 = smov 0   ;;  %s993_s25 = smov 0  }
   0x7 LB: > { %s644_s26 = sadd.s32 4294967295, %s939_s25   ;;  %s645_s27 = sadd.s32 4294967294, %s939_s25   ;;  %s939_s25 = sphi %s993_s25, %s21_s25   ;;  %s935_s24 = sphi %s991_s24, %s1223_s24   ;;  %s931_s23 = sphi %s989_s23, %s1222_s23   ;;  %s927_s22 = sphi %s987_s22, %s1221_s22   ;;  %s923_s21 = sphi %s985_s21, %s1220_s21   ;;  %s919_s20 = sphi %s983_s20, %s1219_s20   ;;  %s915_s19 = sphi %s981_s19, %s1218_s19   ;;  %s911_s18 = sphi %s979_s18, %s1217_s18  }
   0x8   : > { %s30_s28 = sadd.s32 1, %s931_s23  ;;  %s33_s29 = sadd.s32 1, %s935_s24 }
   0x9   : > { %p31_p0 = scmp.ge.s32.totalorder %s30_s28, 3  ;;  %s42_s30 = sadd.s32 1, %s919_s20 }
   0xa   : > { %p49_p1 = scmp.ne.s32.totalorder %s919_s20, %s915_s19  ;;  %p50_p2 = scmp.eq.s32.totalorder %s939_s25, 0 }
   0xb   : > { %s1225_s28 = smov (%p31_p0, %s30_s28), 0  ;;  %s1227_s29 = smov (!%p31_p0, %s33_s29), %s935_s24 }
   0xc   : > { %1206 = sst [smem:[#allocation8_spill]] %s1225_s28  ;;  %s38_s6 = ssub.s32 %s931_s23, %s1225_s28 }
   0xd   : > { %p1032_p3 = por %p50_p2, %p49_p1  ;;  %p35_p4 = scmp.ge.s32.totalorder %s1227_s29, 2 }
   0xe   : > { %p55_p5 = scmp.ne.s32.totalorder %s915_s19, %s911_s18  ;;  %p56_p6 = scmp.eq.s32.totalorder %s644_s26, 0 }
   0xf   : > { %p165_p7 = scmp.eq.s32.totalorder %s644_s26, 5  ;;  %s1229_s29 = smov (%p35_p4, %s1227_s29), 0 }
  0x10   : > { %1208 = sst [smem:[#allocation9_spill]] %s1229_s29  ;;  %p1040_p8 = por %p56_p6, %p55_p5 }
  0x11   : > { %p1044_p9 = por %p165_p7, %p49_p1  ;;  %s37_s10 = ssub.s32 %s935_s24, %s1229_s29 }
  0x12   : > { %p171_p10 = scmp.eq.s32.totalorder %s645_s27, 5  ;;  %s39_s11 = sor.u32 %s38_s6, %s37_s10 }
  0x13   : > { %s1210_s9 = scalar_select %p1044_p9, 1, 0 }
  0x14   : > { %p40_p11 = scmp.eq.s32.totalorder %s39_s11, 0  ;;  %p1050_p12 = por %p171_p10, %p55_p5 }
  0x15   : > { %p733_p13 = scmp.lt.s32.totalorder %s939_s25, 6  ;;  %s203_s13 = sand.u32 1, %s919_s20  }
  0x16   : > { %s1211_s12 = scalar_select %p1050_p12, 1, 0 }
  0x17   : > { %s1057_s14 = scalar_select %p40_p11, %s919_s20, %s42_s30  }
  0x18   : > { %s648_s15 = sshll.u32 %s203_s13, 5  ;;  %s649_s16 = sshll.u32 %s931_s23, 2 }
  0x19   : > { %s719_s17 = smul.u32 12, %s935_s24  ;;  %s207_s26 = scalar_lea.vmem [#allocation2], %s648_s15 }
  0x1a   : > { %s216_s28 = sshll.u32 %s207_s26, 4  ;;  %p1065_p0 = pnand %p733_p13, %p1032_p3  ;;  %s1061_s28 = int_to_ptr.vmem [resolvable:$true] %s216_s28 }
  0x1b   : > { %s213_s6 = sadd.s32 %s719_s17, %s649_s16  ;;  %s1074_s15 = scalar_lea.sflag [#allocation3], %s203_s13 }
  0x1c   : > { %s650_s10 = sshll.u32 %s213_s6, 7  ;;  %p813_p2 = pneg %p1065_p0 }
  0x1d   : > { %s1072_s30 = scalar_lea.hbm %s1197_s0, %s650_s10  ;;  %s816_s29 = scalar_lea.hbm %s1197_s0, 3072 }
  0x1e   : > { %s811_s7 = scalar_lea.hbm %s1072_s30, 512  ;;  %p817_p5 = scmp.lt.u32.totalorder %s1072_s30, %s1197_s0 }
  0x1f   : > { %p812_p1 = scmp.ne.s32.totalorder %s1072_s30, %s811_s7  ;;  %p818_p6 = scmp.lt.u32.totalorder %s816_s29, %s811_s7 }
  0x20   : > { %p820_p10 = scmp.lt.u32.totalorder %s811_s7, %s1072_s30 }
  0x21   : > { %p814_p3 = pnand %p813_p2, %p812_p1  ;;  %p819_p7 = por %p818_p6, %p817_p5 }
  0x23   : > { %p815_p4 = pneg %p814_p3  ;;  %p821_p11 = por %p820_p10, %p819_p7 }
  0x25   : > { %p822_p13 = pnand %p821_p11, %p815_p4 }
  0x27   : > { %825 = shalt.err (!%p822_p13)
}
  0x28   : > { %s826_s13 = scalar_lea.vmem %s1061_s28, 512  ;;  %s941_s10 = smov [#allocation2]  }
  0x29   : > { %p827_p1 = scmp.ne.s32.totalorder %s1061_s28, %s826_s13  ;;  %s831_s11 = sshll.u32 %s941_s10, 4  ;;  %s832_s11 = int_to_ptr.vmem [resolvable:$false] %s831_s11 }
  0x2a   : > { %s833_s16 = scalar_lea.vmem %s832_s11, 1024  ;;  %p834_p9 = scmp.lt.s32.totalorder %s1061_s28, %s832_s11 }
  0x2b   : > { %p829_p3 = pnand %p827_p1, %p813_p2  ;;  %p835_p5 = scmp.lt.s32.totalorder %s833_s16, %s826_s13 }
  0x2d   : > { %p830_p12 = pneg %p829_p3  ;;  %p836_p6 = por %p835_p5, %p834_p9 }
  0x2f   : > { %p837_p7 = pnand %p836_p6, %p830_p12 }
  0x31   : > { %840 = shalt.err (!%p837_p7)
}
  0x32   : > { %s942_s7 = smov 128   ;;  %s943_s17 = smov 8  }
  0x33   : > { %728 = dma.hbm_to_vmem [thread:$0]  (!%p1065_p0), %s1072_s30, 512, %s1061_s28, %s1074_s15, %s942_s7, %s942_s7, %s943_s17  }
  0x34   : > { %p651_p2 = scmp.ge.s32.totalorder %s939_s25, 1  ;;  %p224_p4 = scmp.lt.s32.totalorder %s939_s25, 7 }
  0x36   : > { %p225_p10 = pnand %p651_p2, %p224_p4 }
  0x37   : > { %s1105_s29 = sand.u32 (!%p225_p10), 1, %s915_s19  }
  0x38   : > { %228 = sbr.rel (%p225_p10) target bundleno = 960 (0x3c0), region = 40  ;;  %s652_s26 = sshll.u32 (!%p225_p10), %s1105_s29, 5 }
  0x39   : > { %s231_s6 = scalar_lea.sflag (!%p225_p10), [#allocation3], %s1105_s29  ;;  %s234_s13 = scalar_lea.vmem (!%p225_p10), [#allocation2], %s652_s26 }
  0x3f   : > { %902 = dma.done.wait (%p1040_p8), %s231_s6, 512  }
  0x40   : > { %904 = vsyncadd (%p1040_p8), %s231_s6, 4294966784  ;;  %v944_v0 = vmov 0.0   ;;  %vm945_vm0 = vmmov 0   ;;  %v262_v1 = vld [vmem:[%s234_s13] sm:$0xff]  ;;  %v263_v2 = vld [vmem:[%s234_s13 + $0x8] sm:$0xff]  ;;  %vm275_vm1 = vcmask 261120  }
  0x41   : > { %691 = vmatprep.subr.bf16.mxu0 %v944_v0  ;;  %695 = vmatprep.mubr.msk.bf16.mxu0 %vm945_vm0, %v944_v0  ;;  %v264_v3 = vld [vmem:[%s234_s13 + $0x10] sm:$0xff]  ;;  %v266_v4 = vpack.c.bf16 %v263_v2, %v262_v1  ;;  %v265_v5 = vld [vmem:[%s234_s13 + $0x18] sm:$0xff]  ;;  %v806_v7 = vld [vmem:[%s1200_s3] sm:$0xff]   ;;  %vm396_vm2 = vcmask 130048   ;;  %s720_s13 = smul.u32 12, %s927_s22  ;;  %s671_s28 = sshll.u32 %s923_s21, 2 }
  0x42   : > { %699 = vmatprep.subr.bf16.mxu1 %v944_v0  ;;  %703 = vmatprep.mubr.msk.bf16.mxu1 %vm945_vm0, %v944_v0  ;;  %v267_v6 = vpack.c.bf16 %v265_v5, %v264_v3  ;;  %v805_v8 = vld [vmem:[%s1198_s1] sm:$0xff]   ;;  %v807_v9 = vld [vmem:[%s1200_s3 + $0x8] sm:$0xff]   ;;  %s653_s27 = sshll.u32 %s1105_s29, 4  ;;  %vm533_vm3 = vcmask 257024   ;;  %s539_s16 = scalar_lea.sflag [#allocation4], %s1105_s29 }
  0x43   : > { %692 = vmatpush3.bf16.msra.mxu0 %v266_v4  ;;  %700 = vmatpush3.bf16.msra.mxu1 %v806_v7  ;;  %v808_v15 = vld [vmem:[%s1199_s2] sm:$0xff]   ;;  %v809_v21 = vld [vmem:[%s1199_s2 + $0x8] sm:$0xff]   ;;  %s551_s8 = sadd.s32 %s720_s13, %s671_s28  ;;  %s260_s30 = scalar_lea.vmem [#allocation5], %s653_s27 }
  0x44   : > { %693 = vmatprep.subr.bf16.mxu0 %v944_v0  ;;  %701 = vmatprep.subr.bf16.mxu1 %v944_v0  ;;  %v810_v22 = vld [vmem:[%s1201_s4] sm:$0xff]   ;;  %s554_s15 = sshll.u32 %s260_s30, 4  ;;  %s672_s10 = sshll.u32 %s551_s8, 6  ;;  %s1138_s15 = int_to_ptr.vmem [resolvable:$true] %s554_s15 }
  0x45   : > { %s1143_s11 = scalar_lea.hbm %s1202_s5, %s672_s10  ;;  %s841_s7 = scalar_lea.vmem %s1138_s15, 256 }
  0x46   : > { %p842_p8 = scmp.ne.s32.totalorder %s1138_s15, %s841_s7  ;;  %p1213_p9 = scmp.ne.s32.totalorder %s1210_s9, 0 }
  0x47   : > { %694 = vmatpush3.bf16.msra.mxu0 %v267_v6  ;;  %702 = vmatpush3.bf16.msra.mxu1 %v807_v9  ;;  %s946_s17 = smov [#allocation5]  }
  0x48   : > { %713 = vmatprep.subr.bf16.mxu1 %v810_v22  ;;  %p843_p12 = pnand %p842_p8, %p1213_p9  ;;  %s845_s26 = sshll.u32 %s946_s17, 4  ;;  %s846_s26 = int_to_ptr.vmem [resolvable:$false] %s845_s26 }
  0x49   : > { %s847_s6 = scalar_lea.vmem %s846_s26, 512  ;;  %p848_p11 = scmp.lt.s32.totalorder %s1138_s15, %s846_s26 }
  0x4a   : > { %696 = vmatmul.mubr.msk.bf16.vlgmr.msra.gmra.mrb[0].mxu0 %vm275_vm1, %v805_v8  ;;  %p844_p0 = pneg %p843_p12  ;;  %p849_p13 = scmp.lt.s32.totalorder %s847_s6, %s841_s7 }
  0x4b   : > { %709 = vmatprep.mubr.msk.bf16.mxu0 %vm396_vm2, %v808_v15 }
  0x4c   : > { %p850_p1 = por %p849_p13, %p848_p11 }
  0x4e   : > { %p851_p3 = pnand %p850_p1, %p844_p0 }
 0x11d   : > { %v313_v10 = vpop.f32.mrb[0].mxu0 }
 0x11e   : > { %v697_v11 = vpop.f32.mrb[1].mxu0 }
 0x11f   : > { %v316_v12 = vpop.f32.mrb[2].mxu0 }
 0x120   : > { %v320_v13 = vpack.c.bf16 %v316_v12, %v313_v10  ;;  %v698_v14 = vpop.f32.mrb[3].mxu0 }
 0x122   : > { %704 = vmatmul.mubr.msk.bf16.vlgmr.msra.gmra.mrb[0].mxu1 %vm275_vm1, %v320_v13 }
 0x123   : > { %714 = vmatpush3.bf16.msra.mxu1 %v810_v22 }
 0x1f5   : > { %v374_v16 = vpop.f32.mrb[0].mxu1 }
 0x1f6   : > { %v705_v17 = vpop.f32.mrb[1].mxu1 }
 0x1f7   : > { %v377_v18 = vpop.f32.mrb[2].mxu1 }
 0x1f8   : > { %v385_v19 = vpack.c.bf16 %v377_v18, %v374_v16  ;;  %v706_v20 = vpop.f32.mrb[3].mxu1 }
 0x1fa   : > { %707 = vmatprep.subr.bf16.mxu0 %v385_v19 }
 0x1fb   : > { %708 = vmatpush3.bf16.msra.mxu0 %v385_v19 }
 0x1fe   : > { %710 = vmatmul.mubr.msk.bf16.vlgmr.msra.gmra.mrb[4].mxu0 %vm396_vm2, %v809_v21 }
 0x2d1   : > { %v711_v23 = vpop.f32.mrb[4].mxu0 }
 0x2d2   : > { %v437_v24 = vpop.f32.mrb[5].mxu0 }
 0x2d3   : > { %v712_v25 = vpop.f32.mrb[6].mxu0 }
 0x2d4   : > { %v453_v26 = vpack.c.bf16 %v712_v25, %v711_v23  ;;  %v440_v27 = vpop.f32.mrb[7].mxu0 }
 0x2d5   : > { %v452_v28 = vpack.c.bf16 %v440_v27, %v437_v24 }
 0x2d7   : > { %715 = vmatprep.mubr.msk.bf16.mxu1 %vm396_vm2, %v452_v28 }
 0x2d8   : > { %716 = vmatmul.mubr.msk.bf16.vlgmr.msra.gmra.mrb[4].mxu1 %vm396_vm2, %v453_v26 }
 0x3ab   : > { %v717_v29 = vpop.f32.mrb[4].mxu1 }
 0x3ac   : > { %v677_v30 = vpack.c.bf16 %v717_v29, %v717_v29  ;;  %v502_v31 = vpop.f32.mrb[5].mxu1 }
 0x3ad   : > { %v675_v32 = vpack.c.bf16 %v502_v31, %v502_v31  ;;  %v718_v33 = vpop.f32.mrb[6].mxu1 }
 0x3ae   : > { %536 = vst.msk [vmem:[%s260_s30 + $0x8] sm:$0xf] %vm533_vm3, %v677_v30  ;;  %v678_v34 = vpack.c.bf16 %v718_v33, %v718_v33  ;;  %v505_v35 = vpop.f32.mrb[7].mxu1 }
 0x3af   : > { %534 = vst.msk [vmem:[%s260_s30] sm:$0xf] %vm533_vm3, %v675_v32  ;;  %v676_v36 = vpack.c.bf16 %v505_v35, %v505_v35 }
 0x3b0   : > { %537 = vst.msk [vmem:[%s260_s30 + $0xc] sm:$0xf] %vm533_vm3, %v678_v34 }
 0x3b1   : > { %535 = vst.msk [vmem:[%s260_s30 + $0x4] sm:$0xf] %vm533_vm3, %v676_v36 }
 0x3b2   : > { %854 = shalt.err (!%p851_p3)
}
 0x3b3   : > { %s855_s13 = scalar_lea.hbm %s1143_s11, 256  ;;  %s859_s8 = scalar_lea.hbm %s1202_s5, 1536 }
 0x3b4   : > { %p856_p5 = scmp.ne.s32.totalorder %s1143_s11, %s855_s13  ;;  %p860_p2 = scmp.lt.u32.totalorder %s1143_s11, %s1202_s5 }
 0x3b5   : > { %p861_p4 = scmp.lt.u32.totalorder %s859_s8, %s855_s13  ;;  %p863_p8 = scmp.lt.u32.totalorder %s855_s13, %s1143_s11 }
 0x3b6   : > { %p857_p6 = pnand %p856_p5, %p1213_p9 }
 0x3b7   : > { %p862_p10 = por %p861_p4, %p860_p2 }
 0x3b8   : > { %p858_p7 = pneg %p857_p6 }
 0x3b9   : > { %p864_p12 = por %p863_p8, %p862_p10 }
 0x3bb   : > { %p865_p0 = pnand %p864_p12, %p858_p7 }
 0x3bd   : > { %868 = shalt.err (!%p865_p0)
}
 0x3be   : > { %s947_s21 = smov 64   ;;  %s948_s22 = smov 4  }
 0x3bf   : > { %723 = dma.vmem_to_hbm [thread:$0]  (%p1213_p9), %s1138_s15, 256, %s1143_s11, %s539_s16, %s947_s21, %s947_s21, %s948_s22  }
 0x3c0 PF: > { %p734_p11 = scmp.ge.s32.totalorder %s939_s25, 2  ;;  %s569_s7 = sand.u32 1, %s911_s18  }
 0x3c1   : > { %p1214_p13 = scmp.ne.s32.totalorder %s1211_s12, 0  ;;  %s570_s17 = scalar_lea.sflag [#allocation4], %s569_s7 }
 0x3c3   : > { %p730_p1 = pnand %p734_p11, %p1214_p13 }
 0x3c5   : > { %906 = dma.done.wait (!%p730_p1), %s570_s17, 256  }
 0x3c6   : > { %908 = vsyncadd (!%p730_p1), %s570_s17, 4294967040  ;;  %s21_s25 = sadd.s32 1, %s939_s25   ;;  %s1215_s9 = sld [smem:[#allocation8_spill]] }
 0x3c7   : > { %p18_p3 = scmp.ge.s32.totalorder %s21_s25, 8   ;;  %s1216_s29 = sld [smem:[#allocation9_spill]] }
 0x3c8   : > { %s1217_s18 = smov %s915_s19  ;;  %s1218_s19 = smov %s919_s20 }
 0x3c9   : > { %s1219_s20 = smov %s1057_s14  ;;  %s1220_s21 = smov %s931_s23 }
 0x3ca   : > { %s1221_s22 = smov %s935_s24  ;;  %20 = sbr.rel (!%p18_p3) target bundleno = 7 (0x7), region = 85 }
 0x3cc   : > { %s1222_s23 = smov %s1215_s9 }
 0x3cd   : > { %s1223_s24 = smov %s1216_s29 }
 0x3d1   :  { %575 = vsyncpa [#allocation3], 1 }
 0x3d2   :  { %577 = vsyncpa [#allocation3 + $0x1], 1 }
 0x3d3   :  { %578 = vsyncpa [#allocation4], 1 }
 0x3d4   :  { %580 = vsyncpa [#allocation4 + $0x1], 1 }

</bundles_post_ra>
